<compile_context>
chip_gen: v5e
topology: v5e:2x2
jax: 0.10.0
libtpu: 0.0.40
codegen_flags: <defaults>
</compile_context>

<pallas_src>
import jax
import jax.numpy as jnp
from jax.experimental import pallas as pl
from jax.experimental.pallas import tpu as pltpu


def _round_up(x, m):
    return (x + m - 1) // m * m


def _vmem_budget_bytes():
    """Usable VMEM budget: ~100 MiB on 128 MiB parts (v5e/v6e), ~56 MiB on v7x."""
    cap = 64 << 20
    try:
        info = pltpu.get_tpu_info()
        cap = int(getattr(info, "vmem_capacity_bytes", cap))
    except Exception:
        pass
    return max(min(cap - (8 << 20), 100 << 20), 32 << 20)


# ---------------------------------------------------------------------------
# Kernels
# ---------------------------------------------------------------------------
def resident_residual_kernel(x_ref, w_ref, b_ref, o_ref):
    """Fast path: full weight resident in VMEM, single K step, no scratch."""
    x = x_ref[...]
    y = jnp.dot(x, w_ref[...], preferred_element_type=jnp.float32)
    y = y + b_ref[...].astype(jnp.float32) + x.astype(jnp.float32)
    o_ref[...] = y.astype(o_ref.dtype)


def tiled_residual_kernel(x_ref, w_ref, b_ref, o_ref, acc_ref):
    """K-tiled path.

    f32 accumulator is initialized with the bias at k==0 (no zero pass); the
    residual is folded in from the matmul x tile when the K-block index equals
    the N-block index (requires tk == tn, enforced by the wrapper).
    """
    j = pl.program_id(1)
    k = pl.program_id(2)

    @pl.when(k == 0)
    def _():
        acc_ref[...] = jnp.broadcast_to(
            b_ref[...].astype(jnp.float32), acc_ref.shape)

    @pl.when(k == j)
    def _():
        acc_ref[...] += x_ref[...].astype(jnp.float32)

    acc_ref[...] += jnp.dot(x_ref[...], w_ref[...],
                            preferred_element_type=jnp.float32)

    @pl.when(k == pl.num_programs(2) - 1)
    def _():
        o_ref[...] = acc_ref[...].astype(o_ref.dtype)


# ---------------------------------------------------------------------------
# Wrapper
# ---------------------------------------------------------------------------
def residual_linear(x, w, b, *, tile_m=1024, tile_n=512,
                    compute_dtype=jnp.bfloat16, force_tiled=False):
    """y = x @ W + b + x  for x: (..., H), w: (H, H) laid out (in, out), b: (H,).

    compute_dtype: MXU operand dtype (default bf16, the native MXU dtype on
    v5e/v6e/v7x).  Accumulation, bias add and the store are f32-accurate;
    note the residual term enters at compute_dtype precision.
    Pass compute_dtype=jnp.float32 (or None) for exact-f32 operands.
    """
    orig_shape = x.shape
    H = orig_shape[-1]
    assert w.shape == (H, H), "Residual(Linear) requires a square weight"
    assert b.shape == (H,)
    M = 1
    for d in orig_shape[:-1]:
        M *= d
    x2 = x.reshape(M, H)

    out_dtype = x.dtype
    if compute_dtype is None:
        compute_dtype = x.dtype
    in_sz = jnp.dtype(compute_dtype).itemsize
    out_sz = jnp.dtype(out_dtype).itemsize

    # Sublane packing: 8 rows/vreg at 32-bit, 16 at 16-bit, 32 at 8-bit.
    sub = 8 * max(1, 4 // in_sz)
    budget = _vmem_budget_bytes()

    Hp128 = _round_up(H, 128)
    use_resident = (Hp128 * Hp128 * in_sz <= (8 << 20)) and not force_tiled

    if use_resident:
        # ------------------- resident-weight fast path -------------------
        Hpad = Hp128
        tm = min(tile_m, _round_up(M, sub))

        def ws(tm_):
            return (2 * tm_ * Hpad * in_sz        # x tile (double-buffered)
                    + 2 * Hpad * Hpad * in_sz     # weight (conservative x2)
                    + 2 * 8 * Hpad * 4            # bias (sublane-padded)
                    + 2 * tm_ * Hpad * out_sz)    # output tile

        while tm > sub and ws(tm) > budget:
            tm = _round_up(max(tm // 2, sub), sub)
        Mp = _round_up(M, tm)

        x_p = x2 if (Mp, Hpad) == (M, H) else jnp.pad(
            x2, ((0, Mp - M), (0, Hpad - H)))
        x_p = x_p.astype(compute_dtype)
        w_p = w if Hpad == H else jnp.pad(w, ((0, Hpad - H), (0, Hpad - H)))
        w_p = w_p.astype(compute_dtype)
        b_p = (b if Hpad == H else jnp.pad(b, (0, Hpad - H))).reshape(1, Hpad)

        vmem_limit = min(max(int(ws(tm) * 1.25) + (4 << 20), 32 << 20), budget)

        out_p = pl.pallas_call(
            resident_residual_kernel,
            out_shape=jax.ShapeDtypeStruct((Mp, Hpad), out_dtype),
            grid_spec=pltpu.PrefetchScalarGridSpec(
                num_scalar_prefetch=0,
                grid=(Mp // tm,),
                in_specs=[
                    pl.BlockSpec((tm, Hpad), lambda i: (i, 0)),   # x
                    pl.BlockSpec((Hpad, Hpad), lambda i: (0, 0)), # W (resident)
                    pl.BlockSpec((1, Hpad), lambda i: (0, 0)),    # bias
                ],
                out_specs=pl.BlockSpec((tm, Hpad), lambda i: (i, 0)),
            ),
            compiler_params=pltpu.CompilerParams(
                dimension_semantics=("parallel",),
                vmem_limit_bytes=vmem_limit,
            ),
        )(x_p, w_p, b_p)
    else:
        # ---------------------- K-tiled general path ----------------------
        tn = max(128, min(tile_n, Hp128))
        tn = _round_up(tn, 128)
        tk = tn                      # residual fold requires tk == tn
        Hpad = _round_up(H, tn)      # padded hidden (both K and N, W is square)
        tm = min(tile_m, _round_up(M, sub))

        def ws(tm_):
            return (2 * tm_ * tk * in_sz          # x tile
                    + 2 * tk * tn * in_sz         # weight tile
                    + 2 * 8 * tn * 4              # bias
                    + 2 * tm_ * tn * out_sz       # output tile
                    + tm_ * tn * 4)               # f32 accumulator

        while tm > sub and ws(tm) > budget:
            tm = _round_up(max(tm // 2, sub), sub)
        Mp = _round_up(M, tm)

        x_p = x2 if (Mp, Hpad) == (M, H) else jnp.pad(
            x2, ((0, Mp - M), (0, Hpad - H)))
        x_p = x_p.astype(compute_dtype)
        w_p = w if Hpad == H else jnp.pad(w, ((0, Hpad - H), (0, Hpad - H)))
        w_p = w_p.astype(compute_dtype)
        b_p = (b if Hpad == H else jnp.pad(b, (0, Hpad - H))).reshape(1, Hpad)

        vmem_limit = min(max(int(ws(tm) * 1.25) + (4 << 20), 32 << 20), budget)
        grid = (Mp // tm, Hpad // tn, Hpad // tk)

        out_p = pl.pallas_call(
            tiled_residual_kernel,
            out_shape=jax.ShapeDtypeStruct((Mp, Hpad), out_dtype),
            grid_spec=pltpu.PrefetchScalarGridSpec(
                num_scalar_prefetch=0,
                grid=grid,
                in_specs=[
                    pl.BlockSpec((tm, tk), lambda i, j, k: (i, k)),  # x
                    pl.BlockSpec((tk, tn), lambda i, j, k: (k, j)),  # W tile
                    pl.BlockSpec((1, tn), lambda i, j, k: (0, j)),   # bias
                ],
                out_specs=pl.BlockSpec((tm, tn), lambda i, j, k: (i, j)),
                scratch_shapes=[pltpu.VMEM((tm, tn), jnp.float32)],
            ),
            compiler_params=pltpu.CompilerParams(
                dimension_semantics=("parallel", "parallel", "arbitrary"),
                vmem_limit_bytes=vmem_limit,
            ),
        )(x_p, w_p, b_p)

    if (Mp, Hpad) != (M, H):
        out_p = out_p[:M, :H]
    return out_p.reshape(orig_shape)


if __name__ == "__main__":
    key = jax.random.PRNGKey(0)
    keys = jax.random.split(key, 9)

    # --- 1) small shape, default bf16 operands (resident-weight fast path) ---
    B, S, H = 2, 8, 32
    x = jax.random.normal(keys[0], (B, S, H), dtype=jnp.float32)
    w = jax.random.normal(keys[1], (H, H), dtype=jnp.float32) * (1.0 / jnp.sqrt(H))
    b = jax.random.normal(keys[2], (H,), dtype=jnp.float32) * 0.01

    out = residual_linear(x, w, b)                       # bf16 MXU operands
    jax.block_until_ready(out)
    ref = jnp.einsum("bsh,hk->bsk", x, w) + b + x
    assert out.shape == (B, S, H)
    assert jnp.allclose(out, ref, atol=5e-2, rtol=5e-2)  # bf16 operand tolerance

    # Exact-f32 opt-in path on the same data.
    out_f32 = residual_linear(x, w, b, compute_dtype=jnp.float32)
    jax.block_until_ready(out_f32)
    assert jnp.allclose(out_f32, ref, atol=1e-4, rtol=1e-4)

    # --- 2) ragged shape (M and H padding), default bf16 fast path ---
    B2, S2, H2 = 3, 37, 80
    x2 = jax.random.normal(keys[3], (B2, S2, H2), dtype=jnp.float32)
    w2 = jax.random.normal(keys[4], (H2, H2), dtype=jnp.float32) * (1.0 / jnp.sqrt(H2))
    b2 = jax.random.normal(keys[5], (H2,), dtype=jnp.float32) * 0.01

    out2 = residual_linear(x2, w2, b2)
    jax.block_until_ready(out2)
    ref2 = jnp.einsum("bsh,hk->bsk", x2, w2) + b2 + x2
    assert out2.shape == (B2, S2, H2)
    assert jnp.allclose(out2, ref2, atol=5e-2, rtol=5e-2)

    # --- 3) force the K-tiled path (multi-K accumulator + k==j residual fold),
    #        exact f32 operands, small tiles for correctness coverage only ---
    B3, S3, H3 = 2, 16, 160
    x3 = jax.random.normal(keys[6], (B3, S3, H3), dtype=jnp.float32)
    w3 = jax.random.normal(keys[7], (H3, H3), dtype=jnp.float32) * (1.0 / jnp.sqrt(H3))
    b3 = jax.random.normal(keys[8], (H3,), dtype=jnp.float32) * 0.01

    out3 = residual_linear(x3, w3, b3, tile_n=128, force_tiled=True,
                           compute_dtype=jnp.float32)
    jax.block_until_ready(out3)
    ref3 = jnp.einsum("bsh,hk->bsk", x3, w3) + b3 + x3
    assert out3.shape == (B3, S3, H3)
    assert jnp.allclose(out3, ref3, atol=1e-4, rtol=1e-4)

    print("KERNEL_OK")
</pallas_src>

<mosaic_0001>
module attributes {stable_mosaic.version = 11 : i64} {
  func.func @resident_residual_kernel(%arg0: i32, %arg1: memref<16x128xbf16, #tpu.memory_space<vmem>>, %arg2: memref<128x128xbf16, #tpu.memory_space<vmem>>, %arg3: memref<1x128xf32, #tpu.memory_space<vmem>>, %arg4: memref<16x128xf32, #tpu.memory_space<vmem>>) attributes {dimension_semantics = [#tpu.dimension_semantics<parallel>], iteration_bounds = array<i64: 1>, scalar_prefetch = 0 : i64, scratch_operands = 0 : i64, tpu.core_type = #tpu.core_type<tc>, window_params = [{transform_indices = @transform_0, window_bounds = array<i64: 16, 128>}, {pipeline_mode = #tpu.pipeline_mode<synchronous>, transform_indices = @transform_1, window_bounds = array<i64: 128, 128>}, {pipeline_mode = #tpu.pipeline_mode<synchronous>, transform_indices = @transform_2, window_bounds = array<i64: 1, 128>}, {transform_indices = @transform_3, window_bounds = array<i64: 16, 128>}]} {
    %c0 = arith.constant 0 : index
    %c0_0 = arith.constant 0 : index
    %0 = vector.load %arg1[%c0, %c0_0] : memref<16x128xbf16, #tpu.memory_space<vmem>>, vector<16x128xbf16>
    %c0_1 = arith.constant 0 : index
    %c0_2 = arith.constant 0 : index
    %1 = vector.load %arg2[%c0_1, %c0_2] : memref<128x128xbf16, #tpu.memory_space<vmem>>, vector<128x128xbf16>
    %cst = arith.constant dense<0.000000e+00> : vector<16x128xf32>
    %2 = tpu.matmul %0, %1, %cst {dimension_numbers = #tpu.dot_dimension_numbers<[1], [0], [0], [1], [0, 0, 1, 1], [], []>} : vector<16x128xbf16>, vector<128x128xbf16>, vector<16x128xf32> -> vector<16x128xf32>
    %c0_3 = arith.constant 0 : index
    %c0_4 = arith.constant 0 : index
    %3 = vector.load %arg3[%c0_3, %c0_4] : memref<1x128xf32, #tpu.memory_space<vmem>>, vector<1x128xf32>
    %4 = vector.broadcast %3 : vector<1x128xf32> to vector<16x128xf32>
    %5 = arith.addf %2, %4 : vector<16x128xf32>
    %6 = arith.extf %0 : vector<16x128xbf16> to vector<16x128xf32>
    %7 = arith.addf %5, %6 : vector<16x128xf32>
    %c0_5 = arith.constant 0 : index
    %c0_6 = arith.constant 0 : index
    %8 = vector.load %arg4[%c0_5, %c0_6] : memref<16x128xf32, #tpu.memory_space<vmem>>, vector<16x128xf32>
    tpu.vector_store %arg4[%c0_5, %c0_6], %7 {strides = array<i32>} : memref<16x128xf32, #tpu.memory_space<vmem>>, vector<16x128xf32>,
    return
  }
  func.func @transform_0(%arg0: i32) -> (i32, i32) {
    %c0_i32 = arith.constant 0 : i32
    %c0_i32_0 = arith.constant 0 : i32
    return %arg0, %c0_i32 : i32, i32
  }
  func.func @transform_1(%arg0: i32) -> (i32, i32) {
    %c0_i32 = arith.constant 0 : i32
    %c0_i32_0 = arith.constant 0 : i32
    %c0_i32_1 = arith.constant 0 : i32
    return %c0_i32, %c0_i32_0 : i32, i32
  }
  func.func @transform_2(%arg0: i32) -> (i32, i32) {
    %c0_i32 = arith.constant 0 : i32
    %c0_i32_0 = arith.constant 0 : i32
    %c0_i32_1 = arith.constant 0 : i32
    return %c0_i32, %c0_i32_0 : i32, i32
  }
  func.func @transform_3(%arg0: i32) -> (i32, i32) {
    %c0_i32 = arith.constant 0 : i32
    %c0_i32_0 = arith.constant 0 : i32
    return %arg0, %c0_i32 : i32, i32
  }
}

</mosaic_0001>

<bundles_post_ra>
// kernel: tpu_custom_call.1
= control target key start
LH: loop header
LB: loop body
LE: loop exit
PB: predicated region body
PF: predicated region fallthrough
CT: control target
= control target key end

     0   :  { %8 = vsyncpa [#allocation3], 0  ;;  %s333_s0 = inlined_call_operand.hbm [shape: bf16[16,128], index: 0, kind: input, shape index: {}]   ;;  %s334_s1 = inlined_call_operand.hbm [shape: bf16[128,128], index: 1, kind: input, shape index: {}]   ;;  %s335_s2 = inlined_call_operand.vmem [shape: f32[1,128], index: 2, kind: input, shape index: {}]   ;;  %s336_s3 = inlined_call_operand.hbm [shape: f32[16,128], index: 3, kind: output, shape index: {}]  }
   0x1   :  { %9 = vsyncpa [#allocation6], 0 }
   0x2   :  { %10 = vsyncpa [#allocation4], 0  ;;  %s15_s14 = sshll.u32 %s333_s0, 4  ;;  %s294_s15 = smov [#allocation2]   ;;  %s16_s14 = int_to_ptr.hbm [resolvable:$true] %s15_s14 }
   0x3   :  { %s17_s16 = sshll.u32 %s294_s15, 4  ;;  %s28_s19 = sshll.u32 %s334_s1, 4  ;;  %s18_s16 = int_to_ptr.vmem [resolvable:$true] %s17_s16  ;;  %s29_s19 = int_to_ptr.hbm [resolvable:$true] %s28_s19 }
   0x4   :  { %s295_s20 = smov 64   ;;  %s296_s21 = smov 4  }
   0x5   :  { %23 = dma.hbm_to_vmem [thread:$0]  %s16_s14, 128, %s18_s16, [#allocation3], %s295_s20, %s295_s20, %s296_s21  }
   0x6   :  { %s297_s22 = smov [#allocation5]  }
   0x7   :  { %s30_s23 = sshll.u32 %s297_s22, 4  ;;  %s31_s23 = int_to_ptr.vmem [resolvable:$true] %s30_s23 }
   0x8   :  { %36 = dma.hbm_to_vmem [thread:$0]  %s29_s19, 1024, %s31_s23, [#allocation6], %s295_s20, %s295_s20, %s296_s21  }
   0x9   :  { %288 = dma.done.wait [#allocation3], 128  }
   0xa   :  { %289 = vsyncadd [#allocation3], 4294967168 }
   0xb   :  { %290 = dma.done.wait [#allocation6], 1024  }
   0xc   :  { %291 = vsyncadd [#allocation6], 4294966272  ;;  %v207_v0 = vld [vmem:[#allocation5 + $0x38] sm:$0xff]  ;;  %v206_v1 = vld [vmem:[#allocation5 + $0x30] sm:$0xff]  ;;  %s298_s24 = smov [#allocation7]   ;;  %s149_s28 = sshll.u32 %s336_s3, 4  ;;  %s150_s28 = int_to_ptr.hbm [resolvable:$true] %s149_s28 }
   0xd   :  { %123 = vmatpush.bf16.msra.mxu0 %v207_v0  ;;  %v205_v2 = vld [vmem:[#allocation5 + $0x28] sm:$0xff]  ;;  %v204_v3 = vld [vmem:[#allocation5 + $0x20] sm:$0xff]  ;;  %v203_v4 = vld [vmem:[#allocation5 + $0x18] sm:$0xff]  ;;  %s147_s25 = sshll.u32 %s298_s24, 4  ;;  %s299_s29 = smov 128   ;;  %s148_s25 = int_to_ptr.vmem [resolvable:$true] %s147_s25 }
   0xe   :  { %v202_v5 = vld [vmem:[#allocation5 + $0x10] sm:$0xff]  ;;  %v201_v6 = vld [vmem:[#allocation5 + $0x8] sm:$0xff]  ;;  %v200_v7 = vld [vmem:[#allocation5] sm:$0xff] }
   0xf   :  { %v199_v8 = vld [vmem:[#allocation2] sm:$0xff] }
  0x10   :  { %v47_v9 = vld [vmem:[#allocation2] sm:$0xff]  }
  0x11   :  { %124 = vmatpush.bf16.msra.mxu0 %v206_v1  ;;  %v215_v10 = vld [vmem:[%s335_s2] ss:$0 sm:$0xff]  ;;  %v137_v11 = vunpack.c.l.bf16 %v47_v9  ;;  %v138_v15 = vunpack.c.h.bf16 %v47_v9  ;;  %s300_s2 = smov 8  }
  0x15   :  { %125 = vmatpush.bf16.msra.mxu0 %v205_v2 }
  0x19   :  { %126 = vmatpush.bf16.msra.mxu0 %v204_v3 }
  0x1d   :  { %127 = vmatpush.bf16.msra.mxu0 %v203_v4 }
  0x21   :  { %128 = vmatpush.bf16.msra.mxu0 %v202_v5 }
  0x25   :  { %129 = vmatpush.bf16.msra.mxu0 %v201_v6 }
  0x29   :  { %130 = vmatpush.bf16.msra.mxu0 %v200_v7 }
  0x2c   :  { %131 = vmatmul.bf16.vlgmr.msra.gmra.mxu0 %v199_v8 }
  0xa9   :  { %v132_v12 = vpop.f32.mrf.mxu0 }
  0xaa   :  { %v133_v13 = vadd.f32 %v215_v10, %v132_v12 }
  0xac   :  { %v139_v14 = vadd.f32 %v137_v11, %v133_v13 }
  0xae   :  { %141 = vst [vmem:[#allocation7] sm:$0xff] %v139_v14 }
  0xb1   :  { %v134_v16 = vpop.f32.mrf.mxu0 }
  0xb2   :  { %v135_v17 = vadd.f32 %v215_v10, %v134_v16 }
  0xb4   :  { %v140_v18 = vadd.f32 %v138_v15, %v135_v17 }
  0xb6   :  { %142 = vst [vmem:[#allocation7 + $0x8] sm:$0xff] %v140_v18 }
  0xb7   :  { %155 = dma.vmem_to_hbm [thread:$0]  %s148_s25, 256, %s150_s28, [#allocation4], %s299_s29, %s299_s29, %s300_s2  }
  0xb8   :  { %292 = dma.done.wait [#allocation4], 256  }
  0xb9   :  { %293 = vsyncadd [#allocation4], 4294967040 }
  0xba   :  { %160 = vsyncpa [#allocation3], 1 }
  0xbb   :  { %161 = vsyncpa [#allocation6], 1 }
  0xbc   :  { %162 = vsyncpa [#allocation4], 1 }

</bundles_post_ra>
